<compile_context>
chip_gen: v6e
topology: v6e:2x2x1
jax: 0.10.0
libtpu: 0.0.40
codegen_flags: <defaults>
</compile_context>

<pallas_src>
import jax
import jax.numpy as jnp
from jax.experimental import pallas as pl
from jax.experimental.pallas import tpu as pltpu

_L = 19          # sequence length
_V1 = 16         # embed1 vocab size
_V2 = 4          # embed2 / embed3 vocab size
_LP = 32         # padded sublane extent of the packed int8 seq block
_TYP_ROW = 19    # row of the packed block that carries the typ id
_BIAS_COL = 8    # column of the scalar row that carries the linear bias


def _sigmoid(x):
    # exp -> EUP, approx reciprocal -> EUP; keeps the epilogue off the VALU.
    return pl.reciprocal(1.0 + jnp.exp(-x), approx=True)


def _sgrna_kernel(seq_ref, par_ref, out_ref):
    # seq_ref: (32, TB) int8   rows 0..18 tokens, row 19 typ, rows 20..31 pad
    # par_ref: (33, 16) f32    rows 0..18 MT, rows 19..31 zero, row 32 scalars
    # out_ref: (1, TB)  f32    batch on lanes (lane-dense store)
    x = seq_ref[...].astype(jnp.int32)                      # (32, TB)

    # Streamed "embedding gather": per_pos[l, b] = MT[l, x[l, b]].
    # Pad rows (19..31) of MT are zero, so the typ row / pad rows add nothing.
    acc = jnp.zeros(x.shape, jnp.float32)
    for v in range(_V1):                                    # static unroll, VPU only
        acc = acc + jnp.where(x == v, par_ref[0:_LP, v:v + 1], 0.0)

    # lin[b] = sum_p MT[p, seq[b, p]] + bias  ==  Linear(flatten(embed1(seq)))
    lin = jnp.sum(acc, axis=0, keepdims=True) \
        + par_ref[_LP:_LP + 1, _BIAS_COL:_BIAS_COL + 1]     # (1, TB)

    # typ embeddings (embed2 -> de, embed3 -> dt), typ packed in row 19.
    typ = x[_TYP_ROW:_TYP_ROW + 1, :]                       # (1, TB)
    de = jnp.zeros(lin.shape, jnp.float32)
    e3 = jnp.zeros(lin.shape, jnp.float32)
    for v in range(_V2):                                    # static unroll
        sel = typ == v
        de = de + jnp.where(sel, par_ref[_LP:_LP + 1, v:v + 1], 0.0)
        e3 = e3 + jnp.where(sel, par_ref[_LP:_LP + 1, _V2 + v:_V2 + v + 1], 0.0)
    dt = 3.0 * _sigmoid(e3)

    out_ref[...] = _sigmoid(dt * lin + de)


def sgrna_forward(seq, typ, params, *, batch_tile=1024):
    """Pallas TPU forward for sgrna_net. seq: (B,19) int, typ: (B,1) int."""
    emb1, emb2, emb3, W, b = (params["emb1"], params["emb2"], params["emb3"],
                              params["W"], params["b"])
    B, L = seq.shape
    assert L == _L, f"expected seq length {_L}, got {L}"
    D = emb1.shape[1]
    assert batch_tile % 128 == 0

    # ---- fold Linear weight into embed1 (depends only on params) -------------
    wr = W.reshape(L, D).astype(jnp.float32)                # wr[p, d] = W[0, 2p+d]
    MT = wr @ emb1.astype(jnp.float32).T                    # (19, 16)
    mt_pad = jnp.zeros((_LP, _V1), jnp.float32).at[:L, :].set(MT)
    scal = jnp.zeros((1, _V1), jnp.float32)
    scal = scal.at[0, 0:_V2].set(emb2[:, 0].astype(jnp.float32))
    scal = scal.at[0, _V2:2 * _V2].set(emb3[:, 0].astype(jnp.float32))
    scal = scal.at[0, _BIAS_COL].set(b.reshape(()).astype(jnp.float32))
    par = jnp.concatenate([mt_pad, scal], axis=0)           # (33, 16)

    # ---- pack seq + typ into one lane-major int8 block ------------------------
    bp128 = ((B + 127) // 128) * 128
    TB = min(batch_tile, bp128)                             # lane tile (mult of 128)
    Bp = ((B + TB - 1) // TB) * TB
    packed = jnp.concatenate([seq.astype(jnp.int8), typ.astype(jnp.int8)],
                             axis=1)                        # (B, 20)
    packed = jnp.pad(packed, ((0, Bp - B), (0, _LP - (L + 1))))   # (Bp, 32)
    seq_pack = packed.T                                     # (32, Bp) int8, B on lanes

    out = pl.pallas_call(
        _sgrna_kernel,
        out_shape=jax.ShapeDtypeStruct((1, Bp), jnp.float32),
        grid=(Bp // TB,),
        in_specs=[
            pl.BlockSpec((_LP, TB), lambda i: (0, i)),        # packed seq/typ tile
            pl.BlockSpec((_LP + 1, _V1), lambda i: (0, 0)),   # packed params
        ],
        out_specs=pl.BlockSpec((1, TB), lambda i: (0, i)),    # lane-dense output
        compiler_params=pltpu.CompilerParams(
            dimension_semantics=("parallel",),
            vmem_limit_bytes=32 * 1024 * 1024),
    )(seq_pack, par)

    return out[0, :B].reshape(B, 1)


def sgrna_reference(seq, typ, params):
    """Pure-JAX reference mirroring the PyTorch forward exactly."""
    def sig(x):
        return 1.0 / (1.0 + jnp.exp(-x))
    out = params["emb1"][seq]                               # (B, 19, 2)
    de = params["emb2"][typ][..., 0]                        # (B, 1)
    dt = 3.0 * sig(params["emb3"][typ][..., 0])             # (B, 1)
    flat = out.reshape(out.shape[0], -1)                    # (B, 38)
    lin = flat @ params["W"].T + params["b"]                # (B, 1)
    return sig(dt * lin + de)


if __name__ == "__main__":
    B, L = 8, 19
    key = jax.random.PRNGKey(0)
    k1, k2, k3, k4, k5, k6, k7 = jax.random.split(key, 7)

    bound = 1.0 / (float(2 * L) ** 0.5)   # Linear(38, 1) default init bound
    params = {
        "emb1": jax.random.normal(k1, (16, 2), jnp.float32),
        "emb2": jax.random.normal(k2, (4, 1), jnp.float32),
        "emb3": jax.random.normal(k3, (4, 1), jnp.float32),
        "W": jax.random.uniform(k4, (1, 2 * L), jnp.float32, -bound, bound),
        "b": jax.random.uniform(k5, (1,), jnp.float32, -bound, bound),
    }

    seq = jax.random.randint(k6, (B, L), 0, 16, dtype=jnp.int32)
    typ = jax.random.randint(k7, (B, 1), 0, 4, dtype=jnp.int32)

    out = jax.block_until_ready(sgrna_forward(seq, typ, params))
    ref = jax.block_until_ready(sgrna_reference(seq, typ, params))

    assert out.shape == (B, 1)
    # tolerance loosened vs 1e-5 because the sigmoids use the approx EUP
    # reciprocal (relative error ~1e-4)
    assert jnp.allclose(out, ref, atol=2e-3, rtol=1e-3), (out, ref)

    print("KERNEL_OK")
</pallas_src>

<mosaic_0001>
module attributes {stable_mosaic.version = 11 : i64} {
  func.func @_sgrna_kernel(%arg0: i32, %arg1: memref<32x128xi8, #tpu.memory_space<vmem>>, %arg2: memref<33x16xf32, #tpu.memory_space<vmem>>, %arg3: memref<1x128xf32, #tpu.memory_space<vmem>>) attributes {dimension_semantics = [#tpu.dimension_semantics<parallel>], iteration_bounds = array<i64: 1>, scalar_prefetch = 0 : i64, scratch_operands = 0 : i64, tpu.core_type = #tpu.core_type<tc>, window_params = [{transform_indices = @transform_0, window_bounds = array<i64: 32, 128>}, {pipeline_mode = #tpu.pipeline_mode<synchronous>, transform_indices = @transform_1, window_bounds = array<i64: 33, 16>}, {transform_indices = @transform_2, window_bounds = array<i64: 1, 128>}]} {
    %c0 = arith.constant 0 : index
    %c0_0 = arith.constant 0 : index
    %0 = vector.load %arg1[%c0, %c0_0] : memref<32x128xi8, #tpu.memory_space<vmem>>, vector<32x128xi8>
    %1 = arith.extsi %0 : vector<32x128xi8> to vector<32x128xi32>
    %cst = arith.constant 0.000000e+00 : f32
    %2 = vector.broadcast %cst : f32 to vector<32x128xf32>
    %c0_i32 = arith.constant 0 : i32
    %3 = vector.broadcast %c0_i32 : i32 to vector<32x128xi32>
    %4 = arith.cmpi eq, %1, %3 : vector<32x128xi32>
    %c0_1 = arith.constant 0 : index
    %c0_2 = arith.constant 0 : index
    %5 = vector.load %arg2[%c0_1, %c0_2] : memref<33x16xf32, #tpu.memory_space<vmem>>, vector<32x1xf32>
    %cst_3 = arith.constant 0.000000e+00 : f32
    %6 = vector.shape_cast %5 : vector<32x1xf32> to vector<32x1xf32>
    %7 = vector.broadcast %6 : vector<32x1xf32> to vector<32x128xf32>
    %8 = vector.broadcast %cst_3 : f32 to vector<32x128xf32>
    %9 = arith.select %4, %7, %8 : vector<32x128xi1>, vector<32x128xf32>
    %10 = arith.addf %2, %9 : vector<32x128xf32>
    %c1_i32 = arith.constant 1 : i32
    %11 = vector.broadcast %c1_i32 : i32 to vector<32x128xi32>
    %12 = arith.cmpi eq, %1, %11 : vector<32x128xi32>
    %c0_4 = arith.constant 0 : index
    %c1 = arith.constant 1 : index
    %13 = vector.load %arg2[%c0_4, %c1] : memref<33x16xf32, #tpu.memory_space<vmem>>, vector<32x1xf32>
    %cst_5 = arith.constant 0.000000e+00 : f32
    %14 = vector.shape_cast %13 : vector<32x1xf32> to vector<32x1xf32>
    %15 = vector.broadcast %14 : vector<32x1xf32> to vector<32x128xf32>
    %16 = vector.broadcast %cst_5 : f32 to vector<32x128xf32>
    %17 = arith.select %12, %15, %16 : vector<32x128xi1>, vector<32x128xf32>
    %18 = arith.addf %10, %17 : vector<32x128xf32>
    %c2_i32 = arith.constant 2 : i32
    %19 = vector.broadcast %c2_i32 : i32 to vector<32x128xi32>
    %20 = arith.cmpi eq, %1, %19 : vector<32x128xi32>
    %c0_6 = arith.constant 0 : index
    %c2 = arith.constant 2 : index
    %21 = vector.load %arg2[%c0_6, %c2] : memref<33x16xf32, #tpu.memory_space<vmem>>, vector<32x1xf32>
    %cst_7 = arith.constant 0.000000e+00 : f32
    %22 = vector.shape_cast %21 : vector<32x1xf32> to vector<32x1xf32>
    %23 = vector.broadcast %22 : vector<32x1xf32> to vector<32x128xf32>
    %24 = vector.broadcast %cst_7 : f32 to vector<32x128xf32>
    %25 = arith.select %20, %23, %24 : vector<32x128xi1>, vector<32x128xf32>
    %26 = arith.addf %18, %25 : vector<32x128xf32>
    %c3_i32 = arith.constant 3 : i32
    %27 = vector.broadcast %c3_i32 : i32 to vector<32x128xi32>
    %28 = arith.cmpi eq, %1, %27 : vector<32x128xi32>
    %c0_8 = arith.constant 0 : index
    %c3 = arith.constant 3 : index
    %29 = vector.load %arg2[%c0_8, %c3] : memref<33x16xf32, #tpu.memory_space<vmem>>, vector<32x1xf32>
    %cst_9 = arith.constant 0.000000e+00 : f32
    %30 = vector.shape_cast %29 : vector<32x1xf32> to vector<32x1xf32>
    %31 = vector.broadcast %30 : vector<32x1xf32> to vector<32x128xf32>
    %32 = vector.broadcast %cst_9 : f32 to vector<32x128xf32>
    %33 = arith.select %28, %31, %32 : vector<32x128xi1>, vector<32x128xf32>
    %34 = arith.addf %26, %33 : vector<32x128xf32>
    %c4_i32 = arith.constant 4 : i32
    %35 = vector.broadcast %c4_i32 : i32 to vector<32x128xi32>
    %36 = arith.cmpi eq, %1, %35 : vector<32x128xi32>
    %c0_10 = arith.constant 0 : index
    %c4 = arith.constant 4 : index
    %37 = vector.load %arg2[%c0_10, %c4] : memref<33x16xf32, #tpu.memory_space<vmem>>, vector<32x1xf32>
    %cst_11 = arith.constant 0.000000e+00 : f32
    %38 = vector.shape_cast %37 : vector<32x1xf32> to vector<32x1xf32>
    %39 = vector.broadcast %38 : vector<32x1xf32> to vector<32x128xf32>
    %40 = vector.broadcast %cst_11 : f32 to vector<32x128xf32>
    %41 = arith.select %36, %39, %40 : vector<32x128xi1>, vector<32x128xf32>
    %42 = arith.addf %34, %41 : vector<32x128xf32>
    %c5_i32 = arith.constant 5 : i32
    %43 = vector.broadcast %c5_i32 : i32 to vector<32x128xi32>
    %44 = arith.cmpi eq, %1, %43 : vector<32x128xi32>
    %c0_12 = arith.constant 0 : index
    %c5 = arith.constant 5 : index
    %45 = vector.load %arg2[%c0_12, %c5] : memref<33x16xf32, #tpu.memory_space<vmem>>, vector<32x1xf32>
    %cst_13 = arith.constant 0.000000e+00 : f32
    %46 = vector.shape_cast %45 : vector<32x1xf32> to vector<32x1xf32>
    %47 = vector.broadcast %46 : vector<32x1xf32> to vector<32x128xf32>
    %48 = vector.broadcast %cst_13 : f32 to vector<32x128xf32>
    %49 = arith.select %44, %47, %48 : vector<32x128xi1>, vector<32x128xf32>
    %50 = arith.addf %42, %49 : vector<32x128xf32>
    %c6_i32 = arith.constant 6 : i32
    %51 = vector.broadcast %c6_i32 : i32 to vector<32x128xi32>
    %52 = arith.cmpi eq, %1, %51 : vector<32x128xi32>
    %c0_14 = arith.constant 0 : index
    %c6 = arith.constant 6 : index
    %53 = vector.load %arg2[%c0_14, %c6] : memref<33x16xf32, #tpu.memory_space<vmem>>, vector<32x1xf32>
    %cst_15 = arith.constant 0.000000e+00 : f32
    %54 = vector.shape_cast %53 : vector<32x1xf32> to vector<32x1xf32>
    %55 = vector.broadcast %54 : vector<32x1xf32> to vector<32x128xf32>
    %56 = vector.broadcast %cst_15 : f32 to vector<32x128xf32>
    %57 = arith.select %52, %55, %56 : vector<32x128xi1>, vector<32x128xf32>
    %58 = arith.addf %50, %57 : vector<32x128xf32>
    %c7_i32 = arith.constant 7 : i32
    %59 = vector.broadcast %c7_i32 : i32 to vector<32x128xi32>
    %60 = arith.cmpi eq, %1, %59 : vector<32x128xi32>
    %c0_16 = arith.constant 0 : index
    %c7 = arith.constant 7 : index
    %61 = vector.load %arg2[%c0_16, %c7] : memref<33x16xf32, #tpu.memory_space<vmem>>, vector<32x1xf32>
    %cst_17 = arith.constant 0.000000e+00 : f32
    %62 = vector.shape_cast %61 : vector<32x1xf32> to vector<32x1xf32>
    %63 = vector.broadcast %62 : vector<32x1xf32> to vector<32x128xf32>
    %64 = vector.broadcast %cst_17 : f32 to vector<32x128xf32>
    %65 = arith.select %60, %63, %64 : vector<32x128xi1>, vector<32x128xf32>
    %66 = arith.addf %58, %65 : vector<32x128xf32>
    %c8_i32 = arith.constant 8 : i32
    %67 = vector.broadcast %c8_i32 : i32 to vector<32x128xi32>
    %68 = arith.cmpi eq, %1, %67 : vector<32x128xi32>
    %c0_18 = arith.constant 0 : index
    %c8 = arith.constant 8 : index
    %69 = vector.load %arg2[%c0_18, %c8] : memref<33x16xf32, #tpu.memory_space<vmem>>, vector<32x1xf32>
    %cst_19 = arith.constant 0.000000e+00 : f32
    %70 = vector.shape_cast %69 : vector<32x1xf32> to vector<32x1xf32>
    %71 = vector.broadcast %70 : vector<32x1xf32> to vector<32x128xf32>
    %72 = vector.broadcast %cst_19 : f32 to vector<32x128xf32>
    %73 = arith.select %68, %71, %72 : vector<32x128xi1>, vector<32x128xf32>
    %74 = arith.addf %66, %73 : vector<32x128xf32>
    %c9_i32 = arith.constant 9 : i32
    %75 = vector.broadcast %c9_i32 : i32 to vector<32x128xi32>
    %76 = arith.cmpi eq, %1, %75 : vector<32x128xi32>
    %c0_20 = arith.constant 0 : index
    %c9 = arith.constant 9 : index
    %77 = vector.load %arg2[%c0_20, %c9] : memref<33x16xf32, #tpu.memory_space<vmem>>, vector<32x1xf32>
    %cst_21 = arith.constant 0.000000e+00 : f32
    %78 = vector.shape_cast %77 : vector<32x1xf32> to vector<32x1xf32>
    %79 = vector.broadcast %78 : vector<32x1xf32> to vector<32x128xf32>
    %80 = vector.broadcast %cst_21 : f32 to vector<32x128xf32>
    %81 = arith.select %76, %79, %80 : vector<32x128xi1>, vector<32x128xf32>
    %82 = arith.addf %74, %81 : vector<32x128xf32>
    %c10_i32 = arith.constant 10 : i32
    %83 = vector.broadcast %c10_i32 : i32 to vector<32x128xi32>
    %84 = arith.cmpi eq, %1, %83 : vector<32x128xi32>
    %c0_22 = arith.constant 0 : index
    %c10 = arith.constant 10 : index
    %85 = vector.load %arg2[%c0_22, %c10] : memref<33x16xf32, #tpu.memory_space<vmem>>, vector<32x1xf32>
    %cst_23 = arith.constant 0.000000e+00 : f32
    %86 = vector.shape_cast %85 : vector<32x1xf32> to vector<32x1xf32>
    %87 = vector.broadcast %86 : vector<32x1xf32> to vector<32x128xf32>
    %88 = vector.broadcast %cst_23 : f32 to vector<32x128xf32>
    %89 = arith.select %84, %87, %88 : vector<32x128xi1>, vector<32x128xf32>
    %90 = arith.addf %82, %89 : vector<32x128xf32>
    %c11_i32 = arith.constant 11 : i32
    %91 = vector.broadcast %c11_i32 : i32 to vector<32x128xi32>
    %92 = arith.cmpi eq, %1, %91 : vector<32x128xi32>
    %c0_24 = arith.constant 0 : index
    %c11 = arith.constant 11 : index
    %93 = vector.load %arg2[%c0_24, %c11] : memref<33x16xf32, #tpu.memory_space<vmem>>, vector<32x1xf32>
    %cst_25 = arith.constant 0.000000e+00 : f32
    %94 = vector.shape_cast %93 : vector<32x1xf32> to vector<32x1xf32>
    %95 = vector.broadcast %94 : vector<32x1xf32> to vector<32x128xf32>
    %96 = vector.broadcast %cst_25 : f32 to vector<32x128xf32>
    %97 = arith.select %92, %95, %96 : vector<32x128xi1>, vector<32x128xf32>
    %98 = arith.addf %90, %97 : vector<32x128xf32>
    %c12_i32 = arith.constant 12 : i32
    %99 = vector.broadcast %c12_i32 : i32 to vector<32x128xi32>
    %100 = arith.cmpi eq, %1, %99 : vector<32x128xi32>
    %c0_26 = arith.constant 0 : index
    %c12 = arith.constant 12 : index
    %101 = vector.load %arg2[%c0_26, %c12] : memref<33x16xf32, #tpu.memory_space<vmem>>, vector<32x1xf32>
    %cst_27 = arith.constant 0.000000e+00 : f32
    %102 = vector.shape_cast %101 : vector<32x1xf32> to vector<32x1xf32>
    %103 = vector.broadcast %102 : vector<32x1xf32> to vector<32x128xf32>
    %104 = vector.broadcast %cst_27 : f32 to vector<32x128xf32>
    %105 = arith.select %100, %103, %104 : vector<32x128xi1>, vector<32x128xf32>
    %106 = arith.addf %98, %105 : vector<32x128xf32>
    %c13_i32 = arith.constant 13 : i32
    %107 = vector.broadcast %c13_i32 : i32 to vector<32x128xi32>
    %108 = arith.cmpi eq, %1, %107 : vector<32x128xi32>
    %c0_28 = arith.constant 0 : index
    %c13 = arith.constant 13 : index
    %109 = vector.load %arg2[%c0_28, %c13] : memref<33x16xf32, #tpu.memory_space<vmem>>, vector<32x1xf32>
    %cst_29 = arith.constant 0.000000e+00 : f32
    %110 = vector.shape_cast %109 : vector<32x1xf32> to vector<32x1xf32>
    %111 = vector.broadcast %110 : vector<32x1xf32> to vector<32x128xf32>
    %112 = vector.broadcast %cst_29 : f32 to vector<32x128xf32>
    %113 = arith.select %108, %111, %112 : vector<32x128xi1>, vector<32x128xf32>
    %114 = arith.addf %106, %113 : vector<32x128xf32>
    %c14_i32 = arith.constant 14 : i32
    %115 = vector.broadcast %c14_i32 : i32 to vector<32x128xi32>
    %116 = arith.cmpi eq, %1, %115 : vector<32x128xi32>
    %c0_30 = arith.constant 0 : index
    %c14 = arith.constant 14 : index
    %117 = vector.load %arg2[%c0_30, %c14] : memref<33x16xf32, #tpu.memory_space<vmem>>, vector<32x1xf32>
    %cst_31 = arith.constant 0.000000e+00 : f32
    %118 = vector.shape_cast %117 : vector<32x1xf32> to vector<32x1xf32>
    %119 = vector.broadcast %118 : vector<32x1xf32> to vector<32x128xf32>
    %120 = vector.broadcast %cst_31 : f32 to vector<32x128xf32>
    %121 = arith.select %116, %119, %120 : vector<32x128xi1>, vector<32x128xf32>
    %122 = arith.addf %114, %121 : vector<32x128xf32>
    %c15_i32 = arith.constant 15 : i32
    %123 = vector.broadcast %c15_i32 : i32 to vector<32x128xi32>
    %124 = arith.cmpi eq, %1, %123 : vector<32x128xi32>
    %c0_32 = arith.constant 0 : index
    %c15 = arith.constant 15 : index
    %125 = vector.load %arg2[%c0_32, %c15] : memref<33x16xf32, #tpu.memory_space<vmem>>, vector<32x1xf32>
    %cst_33 = arith.constant 0.000000e+00 : f32
    %126 = vector.shape_cast %125 : vector<32x1xf32> to vector<32x1xf32>
    %127 = vector.broadcast %126 : vector<32x1xf32> to vector<32x128xf32>
    %128 = vector.broadcast %cst_33 : f32 to vector<32x128xf32>
    %129 = arith.select %124, %127, %128 : vector<32x128xi1>, vector<32x128xf32>
    %130 = arith.addf %122, %129 : vector<32x128xf32>
    %cst_34 = arith.constant dense<0.000000e+00> : vector<128xf32>
    %131 = vector.multi_reduction <add>, %130, %cst_34 [0] : vector<32x128xf32> to vector<128xf32>
    %132 = vector.shape_cast %131 : vector<128xf32> to vector<1x128xf32>
    %c32 = arith.constant 32 : index
    %c8_35 = arith.constant 8 : index
    %133 = vector.load %arg2[%c32, %c8_35] : memref<33x16xf32, #tpu.memory_space<vmem>>, vector<1x1xf32>
    %134 = vector.broadcast %133 : vector<1x1xf32> to vector<1x128xf32>
    %135 = arith.addf %132, %134 : vector<1x128xf32>
    %136 = vector.extract_strided_slice %1 {offsets = [19, 0], sizes = [1, 128], strides = [1, 1]} : vector<32x128xi32> to vector<1x128xi32>
    %cst_36 = arith.constant 0.000000e+00 : f32
    %137 = vector.broadcast %cst_36 : f32 to vector<1x128xf32>
    %cst_37 = arith.constant 0.000000e+00 : f32
    %138 = vector.broadcast %cst_37 : f32 to vector<1x128xf32>
    %c0_i32_38 = arith.constant 0 : i32
    %139 = vector.broadcast %c0_i32_38 : i32 to vector<1x128xi32>
    %140 = arith.cmpi eq, %136, %139 : vector<1x128xi32>
    %c32_39 = arith.constant 32 : index
    %c0_40 = arith.constant 0 : index
    %141 = vector.load %arg2[%c32_39, %c0_40] : memref<33x16xf32, #tpu.memory_space<vmem>>, vector<1x1xf32>
    %cst_41 = arith.constant 0.000000e+00 : f32
    %142 = vector.shape_cast %141 : vector<1x1xf32> to vector<1x1xf32>
    %143 = vector.broadcast %142 : vector<1x1xf32> to vector<1x128xf32>
    %144 = vector.broadcast %cst_41 : f32 to vector<1x128xf32>
    %145 = arith.select %140, %143, %144 : vector<1x128xi1>, vector<1x128xf32>
    %146 = arith.addf %137, %145 : vector<1x128xf32>
    %c32_42 = arith.constant 32 : index
    %c4_43 = arith.constant 4 : index
    %147 = vector.load %arg2[%c32_42, %c4_43] : memref<33x16xf32, #tpu.memory_space<vmem>>, vector<1x1xf32>
    %cst_44 = arith.constant 0.000000e+00 : f32
    %148 = vector.shape_cast %147 : vector<1x1xf32> to vector<1x1xf32>
    %149 = vector.broadcast %148 : vector<1x1xf32> to vector<1x128xf32>
    %150 = vector.broadcast %cst_44 : f32 to vector<1x128xf32>
    %151 = arith.select %140, %149, %150 : vector<1x128xi1>, vector<1x128xf32>
    %152 = arith.addf %138, %151 : vector<1x128xf32>
    %c1_i32_45 = arith.constant 1 : i32
    %153 = vector.broadcast %c1_i32_45 : i32 to vector<1x128xi32>
    %154 = arith.cmpi eq, %136, %153 : vector<1x128xi32>
    %c32_46 = arith.constant 32 : index
    %c1_47 = arith.constant 1 : index
    %155 = vector.load %arg2[%c32_46, %c1_47] : memref<33x16xf32, #tpu.memory_space<vmem>>, vector<1x1xf32>
    %cst_48 = arith.constant 0.000000e+00 : f32
    %156 = vector.shape_cast %155 : vector<1x1xf32> to vector<1x1xf32>
    %157 = vector.broadcast %156 : vector<1x1xf32> to vector<1x128xf32>
    %158 = vector.broadcast %cst_48 : f32 to vector<1x128xf32>
    %159 = arith.select %154, %157, %158 : vector<1x128xi1>, vector<1x128xf32>
    %160 = arith.addf %146, %159 : vector<1x128xf32>
    %c32_49 = arith.constant 32 : index
    %c5_50 = arith.constant 5 : index
    %161 = vector.load %arg2[%c32_49, %c5_50] : memref<33x16xf32, #tpu.memory_space<vmem>>, vector<1x1xf32>
    %cst_51 = arith.constant 0.000000e+00 : f32
    %162 = vector.shape_cast %161 : vector<1x1xf32> to vector<1x1xf32>
    %163 = vector.broadcast %162 : vector<1x1xf32> to vector<1x128xf32>
    %164 = vector.broadcast %cst_51 : f32 to vector<1x128xf32>
    %165 = arith.select %154, %163, %164 : vector<1x128xi1>, vector<1x128xf32>
    %166 = arith.addf %152, %165 : vector<1x128xf32>
    %c2_i32_52 = arith.constant 2 : i32
    %167 = vector.broadcast %c2_i32_52 : i32 to vector<1x128xi32>
    %168 = arith.cmpi eq, %136, %167 : vector<1x128xi32>
    %c32_53 = arith.constant 32 : index
    %c2_54 = arith.constant 2 : index
    %169 = vector.load %arg2[%c32_53, %c2_54] : memref<33x16xf32, #tpu.memory_space<vmem>>, vector<1x1xf32>
    %cst_55 = arith.constant 0.000000e+00 : f32
    %170 = vector.shape_cast %169 : vector<1x1xf32> to vector<1x1xf32>
    %171 = vector.broadcast %170 : vector<1x1xf32> to vector<1x128xf32>
    %172 = vector.broadcast %cst_55 : f32 to vector<1x128xf32>
    %173 = arith.select %168, %171, %172 : vector<1x128xi1>, vector<1x128xf32>
    %174 = arith.addf %160, %173 : vector<1x128xf32>
    %c32_56 = arith.constant 32 : index
    %c6_57 = arith.constant 6 : index
    %175 = vector.load %arg2[%c32_56, %c6_57] : memref<33x16xf32, #tpu.memory_space<vmem>>, vector<1x1xf32>
    %cst_58 = arith.constant 0.000000e+00 : f32
    %176 = vector.shape_cast %175 : vector<1x1xf32> to vector<1x1xf32>
    %177 = vector.broadcast %176 : vector<1x1xf32> to vector<1x128xf32>
    %178 = vector.broadcast %cst_58 : f32 to vector<1x128xf32>
    %179 = arith.select %168, %177, %178 : vector<1x128xi1>, vector<1x128xf32>
    %180 = arith.addf %166, %179 : vector<1x128xf32>
    %c3_i32_59 = arith.constant 3 : i32
    %181 = vector.broadcast %c3_i32_59 : i32 to vector<1x128xi32>
    %182 = arith.cmpi eq, %136, %181 : vector<1x128xi32>
    %c32_60 = arith.constant 32 : index
    %c3_61 = arith.constant 3 : index
    %183 = vector.load %arg2[%c32_60, %c3_61] : memref<33x16xf32, #tpu.memory_space<vmem>>, vector<1x1xf32>
    %cst_62 = arith.constant 0.000000e+00 : f32
    %184 = vector.shape_cast %183 : vector<1x1xf32> to vector<1x1xf32>
    %185 = vector.broadcast %184 : vector<1x1xf32> to vector<1x128xf32>
    %186 = vector.broadcast %cst_62 : f32 to vector<1x128xf32>
    %187 = arith.select %182, %185, %186 : vector<1x128xi1>, vector<1x128xf32>
    %188 = arith.addf %174, %187 : vector<1x128xf32>
    %c32_63 = arith.constant 32 : index
    %c7_64 = arith.constant 7 : index
    %189 = vector.load %arg2[%c32_63, %c7_64] : memref<33x16xf32, #tpu.memory_space<vmem>>, vector<1x1xf32>
    %cst_65 = arith.constant 0.000000e+00 : f32
    %190 = vector.shape_cast %189 : vector<1x1xf32> to vector<1x1xf32>
    %191 = vector.broadcast %190 : vector<1x1xf32> to vector<1x128xf32>
    %192 = vector.broadcast %cst_65 : f32 to vector<1x128xf32>
    %193 = arith.select %182, %191, %192 : vector<1x128xi1>, vector<1x128xf32>
    %194 = arith.addf %180, %193 : vector<1x128xf32>
    %cst_66 = arith.constant 0.000000e+00 : f32
    %195 = vector.broadcast %cst_66 : f32 to vector<1x128xf32>
    %196 = arith.subf %195, %194 : vector<1x128xf32>
    %197 = math.exp %196 : vector<1x128xf32>
    %cst_67 = arith.constant 1.000000e+00 : f32
    %198 = vector.broadcast %cst_67 : f32 to vector<1x128xf32>
    %199 = arith.addf %198, %197 : vector<1x128xf32>
    %200 = tpu.reciprocal %199 {approx = true} : vector<1x128xf32> -> vector<1x128xf32>
    %cst_68 = arith.constant 3.000000e+00 : f32
    %201 = vector.broadcast %cst_68 : f32 to vector<1x128xf32>
    %202 = arith.mulf %201, %200 : vector<1x128xf32>
    %203 = arith.mulf %202, %135 : vector<1x128xf32>
    %204 = arith.addf %203, %188 : vector<1x128xf32>
    %cst_69 = arith.constant 0.000000e+00 : f32
    %205 = vector.broadcast %cst_69 : f32 to vector<1x128xf32>
    %206 = arith.subf %205, %204 : vector<1x128xf32>
    %207 = math.exp %206 : vector<1x128xf32>
    %cst_70 = arith.constant 1.000000e+00 : f32
    %208 = vector.broadcast %cst_70 : f32 to vector<1x128xf32>
    %209 = arith.addf %208, %207 : vector<1x128xf32>
    %210 = tpu.reciprocal %209 {approx = true} : vector<1x128xf32> -> vector<1x128xf32>
    %c0_71 = arith.constant 0 : index
    %c0_72 = arith.constant 0 : index
    %211 = vector.load %arg3[%c0_71, %c0_72] : memref<1x128xf32, #tpu.memory_space<vmem>>, vector<1x128xf32>
    tpu.vector_store %arg3[%c0_71, %c0_72], %210 {strides = array<i32>} : memref<1x128xf32, #tpu.memory_space<vmem>>, vector<1x128xf32>,
    return
  }
  func.func @transform_0(%arg0: i32) -> (i32, i32) {
    %c0_i32 = arith.constant 0 : i32
    %c0_i32_0 = arith.constant 0 : i32
    return %c0_i32, %arg0 : i32, i32
  }
  func.func @transform_1(%arg0: i32) -> (i32, i32) {
    %c0_i32 = arith.constant 0 : i32
    %c0_i32_0 = arith.constant 0 : i32
    %c0_i32_1 = arith.constant 0 : i32
    return %c0_i32, %c0_i32_0 : i32, i32
  }
  func.func @transform_2(%arg0: i32) -> (i32, i32) {
    %c0_i32 = arith.constant 0 : i32
    %c0_i32_0 = arith.constant 0 : i32
    return %c0_i32, %arg0 : i32, i32
  }
}

</mosaic_0001>

<bundles_post_ra>
// kernel: tpu_custom_call.1
= control target key start
LH: loop header
LB: loop body
LE: loop exit
PB: predicated region body
PF: predicated region fallthrough
CT: control target
= control target key end

     0   :  { %v671_v2 = vmov 0   ;;  %s959_s0 = inlined_call_operand.vmem [shape: s8[32,128], index: 0, kind: input, shape index: {}]   ;;  %s960_s1 = inlined_call_operand.vmem [shape: f32[33,16], index: 1, kind: input, shape index: {}]   ;;  %s961_s2 = inlined_call_operand.hbm [shape: f32[1,128], index: 2, kind: output, shape index: {}]  }
   0x1   :  { %v706_v0 = vld [vmem:[%s960_s1 + $0x10] sm:$0xff]  ;;  %v711_v1 = vld [vmem:[%s960_s1] sm:$0xff]  ;;  %594 = vset.pattern.permute.xlu1 %v671_v2  ;;  %593 = vset.pattern.permute.xlu0 %v671_v2  ;;  %v720_v3 = vld [vmem:[%s960_s1 + $0x18] sm:$0xff] }
   0x2   :  { %37 = vperm.xlu1 %594, %v706_v0   ;;  %27 = vperm.xlu0 %593, %v711_v1   ;;  %v725_v4 = vld [vmem:[%s960_s1 + $0x8] sm:$0xff] }
   0x3   :  { %7 = vsyncpa [#allocation3], 0  ;;  %v672_v5 = vmov 1   ;;  %v673_v6 = vmov 2   ;;  %v674_v7 = vmov 3   ;;  %v675_v8 = vmov 4  }
   0x4   :  { %v676_v9 = vmov 5   ;;  %v677_v10 = vmov 7   ;;  %v678_v11 = vmov 8   ;;  %v679_v12 = vmov 6   ;;  %v763_v13 = vld [vmem:[%s960_s1 + $0x20] sm:$0x1] }
   0x5   :  { %v680_v14 = vmov 9   ;;  %v681_v15 = vmov 11   ;;  %v682_v16 = vmov 12   ;;  %v683_v17 = vmov 13   ;;  %v12_v22 = vld [vmem:[%s959_s0] sm:$0xff]  ;;  %s687_s0 = smov [#allocation2]  }
   0x6   :  { %42 = vperm.xlu1 %594, %v720_v3   ;;  %32 = vperm.xlu0 %593, %v725_v4   ;;  %v684_v18 = vmov 14   ;;  %v685_v19 = vmov 15   ;;  %v686_v20 = vmov 10   ;;  %v803_v24 = vunpack.c.1.s8 %v12_v22  ;;  %s568_s20 = sshll.u32 %s687_s0, 4  ;;  %s569_s20 = int_to_ptr.vmem [resolvable:$true] %s568_s20 }
   0x7   :  { %v809_v27 = vunpack.c.0.s8 %v12_v22  ;;  %v812_v28 = vunpack.c.2.s8 %v12_v22  ;;  %v828_v42 = vunpack.c.3.s8 %v12_v22  ;;  %s649_s21 = scalar_lea.vmem %s569_s20, 16  ;;  %s653_s22 = scalar_lea.vmem %s569_s20, 32 }
   0x8   :  { %vm18_vm0 = vcmp.eq.s32.totalorder %v803_v24, 0  ;;  %vm54_vm1 = vcmp.eq.s32.totalorder %v803_v24, 1  ;;  %vm82_vm11 = vcmp.eq.s32.totalorder %v803_v24, 2  ;;  %vm110_vm12 = vcmp.eq.s32.totalorder %v803_v24, 3  ;;  %p650_p0 = scmp.ne.s32.totalorder %s569_s20, %s649_s21  ;;  %p654_p1 = scmp.lt.s32.totalorder %s569_s20, %s569_s20 }
   0x9   :  { %vm17_vm2 = vcmp.eq.s32.totalorder %v809_v27, 0  ;;  %vm53_vm3 = vcmp.eq.s32.totalorder %v809_v27, 1  ;;  %vm19_vm4 = vcmp.eq.s32.totalorder %v812_v28, 0  ;;  %vm55_vm5 = vcmp.eq.s32.totalorder %v812_v28, 1  ;;  %p655_p2 = scmp.lt.s32.totalorder %s653_s22, %s649_s21 }
   0xa   :  { %596 = vset.pattern.permute.xlu1 %v672_v5  ;;  %595 = vset.pattern.permute.xlu0 %v672_v5  ;;  %vm81_vm6 = vcmp.eq.s32.totalorder %v809_v27, 2  ;;  %vm56_vm7 = vcmp.eq.s32.totalorder %v828_v42, 1  ;;  %vm83_vm8 = vcmp.eq.s32.totalorder %v812_v28, 2  ;;  %vm20_vm9 = vcmp.eq.s32.totalorder %v828_v42, 0 }
   0xb   :  { %62 = vperm.xlu1 %596, %v725_v4   ;;  %58 = vperm.xlu0 %595, %v711_v1   ;;  %vm84_vm10 = vcmp.eq.s32.totalorder %v828_v42, 2  ;;  %vm111_vm13 = vcmp.eq.s32.totalorder %v812_v28, 3  ;;  %vm109_vm14 = vcmp.eq.s32.totalorder %v809_v27, 3  ;;  %vm137_vm15 = vcmp.eq.s32.totalorder %v809_v27, 4  ;;  %p656_p3 = por %p655_p2, %p654_p1 }
   0xd   :  { %p657_p4 = pnand %p656_p3, %p650_p0 }
   0xf   :  { %66 = vperm.xlu1 %596, %v706_v0   ;;  %70 = vperm.xlu0 %595, %v720_v3  }
  0x13   :  { %597 = vset.pattern.permute.xlu1 %v673_v6  ;;  %598 = vset.pattern.permute.xlu0 %v673_v6 }
  0x14   :  { %86 = vperm.xlu1 %597, %v711_v1   ;;  %90 = vperm.xlu0 %598, %v725_v4  }
  0x18   :  { %94 = vperm.xlu1 %597, %v706_v0   ;;  %599 = vset.pattern.permute.xlu0 %v674_v7 }
  0x19   :  { %114 = vperm.xlu0 %599, %v711_v1  }
  0x1c   :  { %98 = vperm.xlu1 %597, %v720_v3  }
  0x1d   :  { %126 = vperm.xlu0 %599, %v720_v3  }
  0x20   :  { %600 = vset.pattern.permute.xlu1 %v674_v7 }
  0x21   :  { %118 = vperm.xlu1 %600, %v725_v4   ;;  %602 = vset.pattern.permute.xlu0 %v675_v8 }
  0x22   :  { %146 = vperm.xlu0 %602, %v725_v4  }
  0x25   :  { %122 = vperm.xlu1 %600, %v706_v0  }
  0x26   :  { %603 = vset.pattern.permute.xlu0 %v676_v9 }
  0x27   :  { %170 = vperm.xlu0 %603, %v711_v1  }
  0x29   :  { %601 = vset.pattern.permute.xlu1 %v675_v8 }
  0x2a   :  { %142 = vperm.xlu1 %601, %v711_v1  }
  0x2b   :  { %182 = vperm.xlu0 %603, %v720_v3  }
  0x2e   :  { %150 = vperm.xlu1 %601, %v706_v0  }
  0x2f   :  { %606 = vset.pattern.permute.xlu0 %v677_v10 }
  0x30   :  { %226 = vperm.xlu0 %606, %v711_v1  }
  0x32   :  { %154 = vperm.xlu1 %601, %v720_v3  }
  0x34   :  { %238 = vperm.xlu0 %606, %v720_v3  }
  0x36   :  { %604 = vset.pattern.permute.xlu1 %v676_v9 }
  0x37   :  { %174 = vperm.xlu1 %604, %v725_v4  }
  0x38   :  { %609 = vset.pattern.permute.xlu0 %v678_v11 }
  0x39   :  { %258 = vperm.xlu0 %609, %v725_v4  }
  0x3b   :  { %178 = vperm.xlu1 %604, %v706_v0  }
  0x3d   :  { %610 = vset.pattern.permute.xlu0 %v679_v12 }
  0x3e   :  { %202 = vperm.xlu0 %610, %v725_v4  }
  0x3f   :  { %605 = vset.pattern.permute.xlu1 %v679_v12 }
  0x40   :  { %198 = vperm.xlu1 %605, %v711_v1  }
  0x42   :  { %525 = vperm.xlu0 %610, %v763_v13  }
  0x44   :  { %206 = vperm.xlu1 %605, %v706_v0  }
  0x46   :  { %613 = vset.pattern.permute.xlu0 %v680_v14 }
  0x47   :  { %282 = vperm.xlu0 %613, %v711_v1  }
  0x48   :  { %210 = vperm.xlu1 %605, %v720_v3  }
  0x4b   :  { %290 = vperm.xlu0 %613, %v706_v0  }
  0x4c   :  { %607 = vset.pattern.permute.xlu1 %v677_v10 }
  0x4d   :  { %230 = vperm.xlu1 %607, %v725_v4  }
  0x4f   :  { %294 = vperm.xlu0 %613, %v720_v3  }
  0x51   :  { %234 = vperm.xlu1 %607, %v706_v0  }
  0x53   :  { %617 = vset.pattern.permute.xlu0 %v681_v15 }
  0x54   :  { %338 = vperm.xlu0 %617, %v711_v1  }
  0x55   :  { %608 = vset.pattern.permute.xlu1 %v678_v11 }
  0x56   :  { %254 = vperm.xlu1 %608, %v711_v1  }
  0x58   :  { %346 = vperm.xlu0 %617, %v706_v0  }
  0x5a   :  { %262 = vperm.xlu1 %608, %v706_v0  }
  0x5c   :  { %621 = vset.pattern.permute.xlu0 %v682_v16 }
  0x5d   :  { %370 = vperm.xlu0 %621, %v725_v4  }
  0x5e   :  { %266 = vperm.xlu1 %608, %v720_v3  }
  0x61   :  { %624 = vset.pattern.permute.xlu0 %v683_v17 }
  0x62   :  { %611 = vset.pattern.permute.xlu1 %v675_v8  ;;  %394 = vperm.xlu0 %624, %v711_v1  }
  0x63   :  { %497 = vperm.xlu1 %611, %v763_v13  }
  0x66   :  { %402 = vperm.xlu0 %624, %v706_v0  }
  0x67   :  { %612 = vset.pattern.permute.xlu1 %v676_v9 }
  0x68   :  { %511 = vperm.xlu1 %612, %v763_v13  }
  0x6a   :  { %628 = vset.pattern.permute.xlu0 %v684_v18 }
  0x6b   :  { %426 = vperm.xlu0 %628, %v725_v4  }
  0x6c   :  { %614 = vset.pattern.permute.xlu1 %v677_v10 }
  0x6d   :  { %539 = vperm.xlu1 %614, %v763_v13  }
  0x6f   :  { %631 = vset.pattern.permute.xlu0 %v685_v19 }
  0x70   :  { %450 = vperm.xlu0 %631, %v711_v1  }
  0x71   :  { %615 = vset.pattern.permute.xlu1 %v680_v14 }
  0x72   :  { %286 = vperm.xlu1 %615, %v725_v4  }
  0x74   :  { %458 = vperm.xlu0 %631, %v706_v0  }
  0x76   :  { %616 = vset.pattern.permute.xlu1 %v686_v20 }
  0x77   :  { %310 = vperm.xlu1 %616, %v711_v1  }
  0x78   :  { %635 = vset.pattern.permute.xlu0 %v671_v2 }
  0x79   :  { %490 = vperm.xlu0 %635, %v763_v13  }
  0x7b   :  { %314 = vperm.xlu1 %616, %v725_v4  }
  0x7d   :  { %v38_v21 = vpop.permute.xlu1 %37  ;;  %v28_v23 = vpop.permute.xlu0 %27  ;;  %638 = vset.pattern.permute.xlu0 %v678_v11 }
  0x7e   :  { %485 = vperm.xlu0 %638, %v763_v13   ;;  %v45_v34 = vsel %vm17_vm2, %v28_v23, 0.0  ;;  %v47_v38 = vsel %vm19_vm4, %v38_v21, 0.0  ;;  %vm140_vm2 = vcmp.eq.s32.totalorder %v828_v42, 4 }
  0x7f   :  { %318 = vperm.xlu1 %616, %v706_v0  }
  0x81   :  { %v43_v25 = vpop.permute.xlu1 %42  ;;  %v33_v26 = vpop.permute.xlu0 %32 }
  0x82   :  { %640 = vset.pattern.permute.xlu0 %v677_v10  ;;  %v46_v29 = vsel %vm18_vm0, %v33_v26, 0.0  ;;  %v48_v52 = vsel %vm20_vm9, %v43_v25, 0.0  ;;  %vm112_vm0 = vcmp.eq.s32.totalorder %v828_v42, 3  ;;  %vm165_vm9 = vcmp.eq.s32.totalorder %v809_v27, 5 }
  0x83   :  { %618 = vset.pattern.permute.xlu1 %v681_v15 }
  0x84   :  { %342 = vperm.xlu1 %618, %v725_v4  }
  0x86   :  { %v63_v30 = vpop.permute.xlu1 %62  ;;  %v59_v31 = vpop.permute.xlu0 %58 }
  0x87   :  { %v74_v32 = vsel %vm54_vm1, %v63_v30, 0.0  ;;  %v73_v35 = vsel %vm53_vm3, %v59_v31, 0.0  ;;  %vm139_vm1 = vcmp.eq.s32.totalorder %v812_v28, 4  ;;  %vm138_vm3 = vcmp.eq.s32.totalorder %v803_v24, 4 }
  0x88   :  { %v78_v33 = vadd.f32 %v74_v32, %v46_v29  ;;  %619 = vset.pattern.permute.xlu1 %v686_v20  ;;  %v77_v41 = vadd.f32 %v73_v35, %v45_v34 }
  0x89   :  { %322 = vperm.xlu1 %619, %v720_v3  }
  0x8a   :  { %v67_v36 = vpop.permute.xlu1 %66  ;;  %v71_v37 = vpop.permute.xlu0 %70 }
  0x8b   :  { %v75_v39 = vsel %vm55_vm5, %v67_v36, 0.0  ;;  %v76_v48 = vsel %vm56_vm7, %v71_v37, 0.0  ;;  %vm167_vm7 = vcmp.eq.s32.totalorder %v812_v28, 5 }
  0x8c   :  { %v79_v40 = vadd.f32 %v75_v39, %v47_v38  ;;  %v80_v53 = vadd.f32 %v76_v48, %v48_v52 }
  0x8d   :  { %620 = vset.pattern.permute.xlu1 %v682_v16 }
  0x8e   :  { %366 = vperm.xlu1 %620, %v711_v1  }
  0x8f   :  { %v87_v43 = vpop.permute.xlu1 %86  ;;  %v91_v44 = vpop.permute.xlu0 %90 }
  0x90   :  { %v101_v45 = vsel %vm81_vm6, %v87_v43, 0.0  ;;  %v102_v56 = vsel %vm82_vm11, %v91_v44, 0.0  ;;  %vm166_vm6 = vcmp.eq.s32.totalorder %v803_v24, 5  ;;  %vm168_vm11 = vcmp.eq.s32.totalorder %v828_v42, 5 }
  0x91   :  { %v105_v46 = vadd.f32 %v101_v45, %v77_v41  ;;  %v106_v59 = vadd.f32 %v102_v56, %v78_v33 }
  0x92   :  { %622 = vset.pattern.permute.xlu1 %v681_v15 }
  0x93   :  { %350 = vperm.xlu1 %622, %v720_v3   ;;  %v95_v47 = vpop.permute.xlu1 %94 }
  0x94   :  { %v103_v49 = vsel %vm83_vm8, %v95_v47, 0.0  ;;  %v115_v50 = vpop.permute.xlu0 %114 }
  0x95   :  { %v107_v51 = vadd.f32 %v103_v49, %v79_v40  ;;  %v129_v9 = vsel %vm109_vm14, %v115_v50, 0.0  ;;  %vm196_vm14 = vcmp.eq.s32.totalorder %v828_v42, 6 }
  0x96   :  { %v133_v12 = vadd.f32 %v129_v9, %v105_v46 }
  0x97   :  { %623 = vset.pattern.permute.xlu1 %v682_v16  ;;  %v99_v54 = vpop.permute.xlu1 %98 }
  0x98   :  { %v104_v55 = vsel %vm84_vm10, %v99_v54, 0.0  ;;  %374 = vperm.xlu1 %623, %v706_v0   ;;  %v127_v58 = vpop.permute.xlu0 %126  ;;  %vm193_vm10 = vcmp.eq.s32.totalorder %v809_v27, 6 }
  0x99   :  { %v108_v57 = vadd.f32 %v104_v55, %v80_v53  ;;  %v132_v21 = vsel %vm112_vm0, %v127_v58, 0.0  ;;  %vm222_vm0 = vcmp.eq.s32.totalorder %v803_v24, 7 }
  0x9b   :  { %v136_v26 = vadd.f32 %v132_v21, %v108_v57 }
  0x9c   :  { %625 = vset.pattern.permute.xlu1 %v683_v17  ;;  %v119_v60 = vpop.permute.xlu1 %118 }
  0x9d   :  { %v130_v61 = vsel %vm110_vm12, %v119_v60, 0.0  ;;  %398 = vperm.xlu1 %625, %v725_v4   ;;  %v147_v63 = vpop.permute.xlu0 %146  ;;  %vm195_vm12 = vcmp.eq.s32.totalorder %v812_v28, 6 }
  0x9e   :  { %v134_v62 = vadd.f32 %v130_v61, %v106_v59  ;;  %v158_v31 = vsel %vm138_vm3, %v147_v63, 0.0  ;;  %vm249_vm3 = vcmp.eq.s32.totalorder %v809_v27, 8 }
  0xa0   :  { %v123_v2 = vpop.permute.xlu1 %122  ;;  %v162_v33 = vadd.f32 %v158_v31, %v134_v62 }
  0xa1   :  { %v131_v8 = vsel %vm111_vm13, %v123_v2, 0.0  ;;  %626 = vset.pattern.permute.xlu1 %v682_v16 }
  0xa2   :  { %v135_v10 = vadd.f32 %v131_v8, %v107_v51  ;;  %378 = vperm.xlu1 %626, %v720_v3   ;;  %v171_v11 = vpop.permute.xlu0 %170 }
  0xa3   :  { %v185_v39 = vsel %vm165_vm9, %v171_v11, 0.0  ;;  %vm252_vm9 = vcmp.eq.s32.totalorder %v828_v42, 8 }
  0xa5   :  { %v143_v14 = vpop.permute.xlu1 %142 }
  0xa6   :  { %v157_v15 = vsel %vm137_vm15, %v143_v14, 0.0  ;;  %627 = vset.pattern.permute.xlu1 %v684_v18  ;;  %v183_v23 = vpop.permute.xlu0 %182  ;;  %vm194_vm15 = vcmp.eq.s32.totalorder %v803_v24, 6 }
  0xa7   :  { %v161_v20 = vadd.f32 %v157_v15, %v133_v12  ;;  %422 = vperm.xlu1 %627, %v711_v1   ;;  %v188_v46 = vsel %vm168_vm11, %v183_v23, 0.0  ;;  %vm277_vm11 = vcmp.eq.s32.totalorder %v809_v27, 9 }
  0xa9   :  { %v151_v16 = vpop.permute.xlu1 %150 }
  0xaa   :  { %v159_v22 = vsel %vm139_vm1, %v151_v16, 0.0  ;;  %vm223_vm1 = vcmp.eq.s32.totalorder %v812_v28, 7 }
  0xab   :  { %v163_v25 = vadd.f32 %v159_v22, %v135_v10  ;;  %629 = vset.pattern.permute.xlu1 %v683_v17  ;;  %v227_v32 = vpop.permute.xlu0 %226 }
  0xac   :  { %406 = vperm.xlu1 %629, %v720_v3  }
  0xad   :  { %v155_v29 = vpop.permute.xlu1 %154 }
  0xae   :  { %v160_v30 = vsel %vm140_vm2, %v155_v29, 0.0  ;;  %vm221_vm2 = vcmp.eq.s32.totalorder %v809_v27, 7 }
  0xaf   :  { %v164_v1 = vadd.f32 %v160_v30, %v136_v26  ;;  %v239_v36 = vpop.permute.xlu0 %238  ;;  %v241_v57 = vsel %vm221_vm2, %v227_v32, 0.0  ;;  %vm333_vm2 = vcmp.eq.s32.totalorder %v809_v27, 11 }
  0xb0   :  { %630 = vset.pattern.permute.xlu1 %v684_v18 }
  0xb1   :  { %430 = vperm.xlu1 %630, %v706_v0   ;;  %v189_v0 = vadd.f32 %v185_v39, %v161_v20  ;;  %v192_v50 = vadd.f32 %v188_v46, %v164_v1 }
  0xb2   :  { %v175_v17 = vpop.permute.xlu1 %174 }
  0xb3   :  { %v186_v34 = vsel %vm166_vm6, %v175_v17, 0.0  ;;  %vm224_vm6 = vcmp.eq.s32.totalorder %v828_v42, 7 }
  0xb4   :  { %v190_v35 = vadd.f32 %v186_v34, %v162_v33  ;;  %v869_v43 = vpop.permute.xlu0 %258  ;;  %v244_v63 = vsel %vm224_vm6, %v239_v36, 0.0  ;;  %vm335_vm6 = vcmp.eq.s32.totalorder %v812_v28, 11 }
  0xb5   :  { %632 = vset.pattern.permute.xlu1 %v685_v19 }
  0xb6   :  { %454 = vperm.xlu1 %632, %v725_v4   ;;  %v179_v37 = vpop.permute.xlu1 %178 }
  0xb7   :  { %v187_v38 = vsel %vm167_vm7, %v179_v37, 0.0  ;;  %vm251_vm7 = vcmp.eq.s32.totalorder %v812_v28, 8 }
  0xb8   :  { %v191_v40 = vadd.f32 %v187_v38, %v163_v25 }
  0xb9   :  { %v203_v48 = vpop.permute.xlu0 %202 }
  0xba   :  { %633 = vset.pattern.permute.xlu1 %v684_v18  ;;  %v214_v52 = vsel %vm194_vm15, %v203_v48, 0.0  ;;  %vm305_vm15 = vcmp.eq.s32.totalorder %v809_v27, 10 }
  0xbb   :  { %434 = vperm.xlu1 %633, %v720_v3   ;;  %v199_v41 = vpop.permute.xlu1 %198 }
  0xbc   :  { %v213_v44 = vsel %vm193_vm10, %v199_v41, 0.0  ;;  %vm250_vm10 = vcmp.eq.s32.totalorder %v803_v24, 8 }
  0xbd   :  { %v217_v45 = vadd.f32 %v213_v44, %v189_v0  ;;  %v526_v21 = vpop.permute.xlu0 %525 }
  0xbe   :  { %v527_v36 = vrot.slane %v526_v21, 5 }
  0xbf   :  { %634 = vset.pattern.permute.xlu1 %v685_v19  ;;  %v207_v4 = vpop.permute.xlu1 %206  ;;  %v218_v19 = vadd.f32 %v214_v52, %v190_v35 }
  0xc0   :  { %v215_v47 = vsel %vm195_vm12, %v207_v4, 0.0  ;;  %462 = vperm.xlu1 %634, %v720_v3   ;;  %vm279_vm12 = vcmp.eq.s32.totalorder %v812_v28, 9 }
  0xc1   :  { %v219_v18 = vadd.f32 %v215_v47, %v191_v40  ;;  %v529_v40 = vsel %vm83_vm8, %v527_v36, 0.0 }
  0xc2   :  { %v283_v23 = vpop.permute.xlu0 %282 }
  0xc3   :  { %v211_v49 = vpop.permute.xlu1 %210  ;;  %v297_v48 = vsel %vm277_vm11, %v283_v23, 0.0  ;;  %vm389_vm11 = vcmp.eq.s32.totalorder %v809_v27, 13 }
  0xc4   :  { %v216_v51 = vsel %vm196_vm14, %v211_v49, 0.0  ;;  %636 = vset.pattern.permute.xlu1 %v672_v5  ;;  %vm278_vm14 = vcmp.eq.s32.totalorder %v803_v24, 9 }
  0xc5   :  { %v220_v53 = vadd.f32 %v216_v51, %v192_v50  ;;  %504 = vperm.xlu1 %636, %v763_v13  }
  0xc6   :  { %v291_v29 = vpop.permute.xlu0 %290 }
  0xc7   :  { %v299_v50 = vsel %vm279_vm12, %v291_v29, 0.0  ;;  %vm390_vm12 = vcmp.eq.s32.totalorder %v803_v24, 13 }
  0xc8   :  { %v231_v54 = vpop.permute.xlu1 %230 }
  0xc9   :  { %v242_v3 = vsel %vm222_vm0, %v231_v54, 0.0  ;;  %637 = vset.pattern.permute.xlu1 %v673_v6  ;;  %v245_v6 = vadd.f32 %v241_v57, %v217_v45  ;;  %vm306_vm0 = vcmp.eq.s32.totalorder %v803_v24, 10 }
  0xca   :  { %v881_v55 = vadd.f32 %v242_v3, %v218_v19  ;;  %518 = vperm.xlu1 %637, %v763_v13   ;;  %v896_v31 = vpop.permute.xlu0 %294 }
  0xcc   :  { %v235_v5 = vpop.permute.xlu1 %234 }
  0xcd   :  { %v243_v56 = vsel %vm223_vm1, %v235_v5, 0.0  ;;  %vm307_vm1 = vcmp.eq.s32.totalorder %v812_v28, 10 }
  0xce   :  { %v247_v58 = vadd.f32 %v243_v56, %v219_v18  ;;  %639 = vset.pattern.permute.xlu1 %v674_v7  ;;  %v248_v7 = vadd.f32 %v244_v63, %v220_v53  ;;  %v270_v18 = vsel %vm250_vm10, %v869_v43, 0.0  ;;  %vm363_vm10 = vcmp.eq.s32.totalorder %v812_v28, 12 }
  0xcf   :  { %532 = vperm.xlu1 %639, %v763_v13   ;;  %v339_v32 = vpop.permute.xlu0 %338  ;;  %v274_v19 = vadd.f32 %v270_v18, %v881_v55 }
  0xd1   :  { %v255_v59 = vpop.permute.xlu1 %254 }
  0xd2   :  { %v269_v60 = vsel %vm249_vm3, %v255_v59, 0.0  ;;  %vm334_vm3 = vcmp.eq.s32.totalorder %v803_v24, 11 }
  0xd3   :  { %v273_v61 = vadd.f32 %v269_v60, %v245_v6  ;;  %v347_v34 = vpop.permute.xlu0 %346  ;;  %v353_v6 = vsel %vm333_vm2, %v339_v32, 0.0  ;;  %vm419_vm2 = vcmp.eq.s32.totalorder %v812_v28, 14 }
  0xd5   :  { %v263_v62 = vpop.permute.xlu1 %262  ;;  %v301_v53 = vadd.f32 %v297_v48, %v273_v61 }
  0xd6   :  { %v271_v2 = vsel %vm251_vm7, %v263_v62, 0.0  ;;  %vm361_vm7 = vcmp.eq.s32.totalorder %v809_v27, 12  ;;  %v355_v62 = vsel %vm335_vm6, %v347_v34, 0.0  ;;  %vm445_vm6 = vcmp.eq.s32.totalorder %v809_v27, 15 }
  0xd7   :  { %v275_v8 = vadd.f32 %v271_v2, %v247_v58 }
  0xd8   :  { %v371_v44 = vpop.permute.xlu0 %370 }
  0xd9   :  { %v267_v9 = vpop.permute.xlu1 %266  ;;  %v303_v56 = vadd.f32 %v299_v50, %v275_v8 }
  0xda   :  { %v272_v10 = vsel %vm252_vm9, %v267_v9, 0.0  ;;  %vm362_vm9 = vcmp.eq.s32.totalorder %v803_v24, 12 }
  0xdb   :  { %v892_v13 = vadd.f32 %v272_v10, %v248_v7 }
  0xdd   :  { %v395_v46 = vpop.permute.xlu0 %394 }
  0xde   :  { %v498_v11 = vpop.permute.xlu1 %497 }
  0xdf   :  { %v499_v17 = vrot.slane %v498_v11, 5  ;;  %v382_v11 = vsel %vm362_vm9, %v371_v44, 0.0  ;;  %vm447_vm9 = vcmp.eq.s32.totalorder %v812_v28, 15 }
  0xe1   :  { %v501_v38 = vsel %vm19_vm4, %v499_v17, 0.0  ;;  %v403_v54 = vpop.permute.xlu0 %402 }
  0xe3   :  { %v512_v12 = vpop.permute.xlu1 %511 }
  0xe4   :  { %v513_v33 = vrot.slane %v512_v12, 5 }
  0xe6   :  { %v515_v37 = vsel %vm55_vm5, %v513_v33, 0.0  ;;  %v427_v8 = vpop.permute.xlu0 %426 }
  0xe7   :  { %v516_v39 = vadd.f32 %v515_v37, %v501_v38 }
  0xe8   :  { %v540_v14 = vpop.permute.xlu1 %539 }
  0xe9   :  { %v541_v0 = vrot.slane %v540_v14, 5  ;;  %v530_v45 = vadd.f32 %v529_v40, %v516_v39 }
  0xeb   :  { %v543_v4 = vsel %vm111_vm13, %v541_v0, 0.0  ;;  %v451_v23 = vpop.permute.xlu0 %450 }
  0xec   :  { %v544_v49 = vadd.f32 %v543_v4, %v530_v45  ;;  %v465_v40 = vsel %vm445_vm6, %v451_v23, 0.0 }
  0xed   :  { %v287_v15 = vpop.permute.xlu1 %286 }
  0xee   :  { %v298_v51 = vsel %vm278_vm14, %v287_v15, 0.0  ;;  %v545_v57 = vsub.f32 0.0, %v544_v49  ;;  %vm391_vm14 = vcmp.eq.s32.totalorder %v812_v28, 13 }
  0xef   :  { %v302_v58 = vadd.f32 %v298_v51, %v274_v19  ;;  %v459_v38 = vpop.permute.xlu0 %458 }
  0xf0   :  { %v546_v2 = vmul.f32 1.442695, %v545_v57  ;;  %v467_v45 = vsel %vm447_vm9, %v459_v38, 0.0 }
  0xf2   :  { %v311_v20 = vpop.permute.xlu1 %310  ;;  %641 = vpow2.f32 %v546_v2 }
  0xf3   :  { %v325_v52 = vsel %vm305_vm15, %v311_v20, 0.0  ;;  %vm417_vm15 = vcmp.eq.s32.totalorder %v809_v27, 14  ;;  %v409_v20 = vsel %vm389_vm11, %v395_v46, 0.0  ;;  %vm364_vm11 = vcmp.eq.s32.totalorder %v828_v42, 12 }
  0xf4   :  { %v329_v59 = vadd.f32 %v325_v52, %v301_v53 }
  0xf6   :  { %v315_v16 = vpop.permute.xlu1 %314  ;;  %v357_v9 = vadd.f32 %v353_v6, %v329_v59  ;;  %v491_v6 = vpop.permute.xlu0 %490 }
  0xf7   :  { %v326_v3 = vsel %vm306_vm0, %v315_v16, 0.0  ;;  %vm280_vm0 = vcmp.eq.s32.totalorder %v828_v42, 9 }
  0xf8   :  { %v330_v61 = vadd.f32 %v326_v3, %v302_v58  ;;  %v300_v17 = vsel %vm280_vm0, %v896_v31, 0.0 }
  0xf9   :  { %v304_v27 = vadd.f32 %v300_v17, %v892_v13 }
  0xfa   :  { %v319_v22 = vpop.permute.xlu1 %318 }
  0xfb   :  { %v327_v5 = vsel %vm307_vm1, %v319_v22, 0.0  ;;  %vm418_vm1 = vcmp.eq.s32.totalorder %v803_v24, 14 }
  0xfc   :  { %v331_v55 = vadd.f32 %v327_v5, %v303_v56  ;;  %v438_v34 = vsel %vm418_vm1, %v427_v8, 0.0 }
  0xfe   :  { %v359_v14 = vadd.f32 %v355_v62, %v331_v55  ;;  %v492_v55 = vrot.slane %v491_v6, 5 }
  0xff   :  { %v343_v25 = vpop.permute.xlu1 %342  ;;  %v642_v19 = vpop.eup %641 }
 0x100   :  { %v354_v60 = vsel %vm334_vm3, %v343_v25, 0.0  ;;  %v411_v25 = vsel %vm391_vm14, %v403_v54, 0.0  ;;  %vm308_vm3 = vcmp.eq.s32.totalorder %v828_v42, 10  ;;  %vm420_vm14 = vcmp.eq.s32.totalorder %v828_v42, 14 }
 0x101   :  { %v358_v7 = vadd.f32 %v354_v60, %v330_v61  ;;  %v548_v3 = vadd.f32 1.0, %v642_v19 }
 0x103   :  { %v386_v21 = vadd.f32 %v382_v11, %v358_v7  ;;  %643 = vrcp.f32 %v548_v3  ;;  %v486_v11 = vpop.permute.xlu0 %485 }
 0x104   :  { %v894_v26 = vpop.permute.xlu1 %322 }
 0x105   :  { %v328_v39 = vsel %vm308_vm3, %v894_v26, 0.0 }
 0x106   :  { %v332_v46 = vadd.f32 %v328_v39, %v304_v27 }
 0x109   :  { %v367_v30 = vpop.permute.xlu1 %366 }
 0x10a   :  { %v381_v63 = vsel %vm361_vm7, %v367_v30, 0.0  ;;  %vm336_vm7 = vcmp.eq.s32.totalorder %v828_v42, 11 }
 0x10b   :  { %v385_v15 = vadd.f32 %v381_v63, %v357_v9 }
 0x10d   :  { %v413_v32 = vadd.f32 %v409_v20, %v385_v15 }
 0x10e   :  { %v898_v1 = vpop.permute.xlu1 %350 }
 0x10f   :  { %v356_v44 = vsel %vm336_vm7, %v898_v1, 0.0 }
 0x110   :  { %v360_v26 = vadd.f32 %v356_v44, %v332_v46  ;;  %v644_v20 = vpop.eup %643 }
 0x113   :  { %v375_v35 = vpop.permute.xlu1 %374 }
 0x114   :  { %v383_v12 = vsel %vm363_vm10, %v375_v35, 0.0  ;;  %vm446_vm10 = vcmp.eq.s32.totalorder %v803_v24, 15 }
 0x115   :  { %v387_v22 = vadd.f32 %v383_v12, %v359_v14 }
 0x117   :  { %v415_v36 = vadd.f32 %v411_v25, %v387_v22  ;;  %v550_v25 = vmul.f32 3.0, %v644_v20 }
 0x118   :  { %v399_v41 = vpop.permute.xlu1 %398 }
 0x119   :  { %v410_v16 = vsel %vm390_vm12, %v399_v41, 0.0  ;;  %vm392_vm12 = vcmp.eq.s32.totalorder %v828_v42, 13 }
 0x11a   :  { %v414_v33 = vadd.f32 %v410_v16, %v386_v21 }
 0x11c   :  { %v442_v0 = vadd.f32 %v438_v34, %v414_v33 }
 0x11d   :  { %v913_v47 = vpop.permute.xlu1 %378 }
 0x11e   :  { %v384_v24 = vsel %vm364_vm11, %v913_v47, 0.0 }
 0x11f   :  { %v388_v52 = vadd.f32 %v384_v24, %v360_v26 }
 0x122   :  { %v423_v43 = vpop.permute.xlu1 %422 }
 0x123   :  { %v437_v29 = vsel %vm417_vm15, %v423_v43, 0.0  ;;  %vm448_vm15 = vcmp.eq.s32.totalorder %v828_v42, 15  ;;  %v494_v42 = vsel %vm19_vm4, %v492_v55, 0.0 }
 0x124   :  { %v441_v37 = vadd.f32 %v437_v29, %v413_v32 }
 0x126   :  { %v469_v18 = vadd.f32 %v465_v40, %v441_v37 }
 0x127   :  { %v407_v10 = vpop.permute.xlu1 %406 }
 0x128   :  { %v412_v13 = vsel %vm392_vm12, %v407_v10, 0.0 }
 0x129   :  { %v416_v54 = vadd.f32 %v412_v13, %v388_v52 }
 0x12c   :  { %v431_v30 = vpop.permute.xlu1 %430 }
 0x12d   :  { %v439_v35 = vsel %vm419_vm2, %v431_v30, 0.0 }
 0x12e   :  { %v443_v31 = vadd.f32 %v439_v35, %v415_v36 }
 0x130   :  { %v471_v49 = vadd.f32 %v467_v45, %v443_v31 }
 0x131   :  { %v455_v41 = vpop.permute.xlu1 %454 }
 0x132   :  { %v466_v4 = vsel %vm446_vm10, %v455_v41, 0.0 }
 0x133   :  { %v470_v48 = vadd.f32 %v466_v4, %v442_v0 }
 0x135   :  { %v473_v50 = vadd.f32 %v470_v48, %v469_v18 }
 0x136   :  { %v435_v51 = vpop.permute.xlu1 %434 }
 0x137   :  { %v474_v53 = vadd.f32 %v473_v50, %v471_v49  ;;  %v440_v1 = vsel %vm420_vm14, %v435_v51, 0.0 }
 0x138   :  { %v444_v5 = vadd.f32 %v440_v1, %v416_v54 }
 0x13b   :  { %v463_v43 = vpop.permute.xlu1 %462 }
 0x13c   :  { %v468_v56 = vsel %vm448_vm15, %v463_v43, 0.0 }
 0x13d   :  { %v472_v57 = vadd.f32 %v468_v56, %v444_v5 }
 0x13f   :  { %v475_v47 = vadd.f32 %v474_v53, %v472_v57 }
 0x140   :  { %v505_v58 = vpop.permute.xlu1 %504 }
 0x141   :  { %v476_v59 = vrot.slane %v475_v47, 4  ;;  %v506_v61 = vrot.slane %v505_v58, 5 }
 0x143   :  { %v477_v60 = vadd.f32 %v476_v59, %v475_v47  ;;  %v508_v9 = vsel %vm55_vm5, %v506_v61, 0.0 }
 0x144   :  { %v509_v12 = vadd.f32 %v508_v9, %v494_v42 }
 0x145   :  { %v519_v62 = vpop.permute.xlu1 %518  ;;  %v478_v63 = vrot.slane %v477_v60, 2 }
 0x146   :  { %v520_v7 = vrot.slane %v519_v62, 5 }
 0x147   :  { %v479_v2 = vadd.f32 %v478_v63, %v477_v60 }
 0x148   :  { %v522_v16 = vsel %vm83_vm8, %v520_v7, 0.0 }
 0x149   :  { %v480_v8 = vrot.slane %v479_v2, 1  ;;  %v523_v23 = vadd.f32 %v522_v16, %v509_v12 }
 0x14a   :  { %v533_v10 = vpop.permute.xlu1 %532 }
 0x14b   :  { %v534_v14 = vrot.slane %v533_v10, 5  ;;  %v481_v15 = vadd.f32 %v480_v8, %v479_v2 }
 0x14d   :  { %v488_v21 = vadd.f32 %v486_v11, %v481_v15  ;;  %v536_v22 = vsel %vm111_vm13, %v534_v14, 0.0 }
 0x14e   :  { %v537_v30 = vadd.f32 %v536_v22, %v523_v23 }
 0x14f   :  { %v552_v29 = vrot.slane %v488_v21, 5 }
 0x151   :  { %v554_v32 = vmul.f32 %v552_v29, %v550_v25 }
 0x153   :  { %v555_v33 = vadd.f32 %v554_v32, %v537_v30 }
 0x155   :  { %v556_v17 = vsub.f32 0.0, %v555_v33 }
 0x157   :  { %v557_v34 = vmul.f32 1.442695, %v556_v17 }
 0x159   :  { %645 = vpow2.f32 %v557_v34 }
 0x166   :  { %v646_v35 = vpop.eup %645 }
 0x167   :  { %v559_v36 = vadd.f32 1.0, %v646_v35 }
 0x169   :  { %647 = vrcp.f32 %v559_v36 }
 0x176   :  { %v648_v37 = vpop.eup %647 }
 0x177   :  { %561 = vst [vmem:[#allocation2 - $0x3] sm:$0x8] %v648_v37 }
 0x178   :  { %660 = shalt.err (!%p657_p4)
}
 0x179   :  { %571 = dma.vmem_to_hbm [thread:$0]  %s569_s20, 16, %s961_s2, [#allocation3]  }
 0x17a   :  { %669 = dma.done.wait [#allocation3], 16  }
 0x17b   :  { %670 = vsyncadd [#allocation3], 4294967280 }
 0x17c   :  { %575 = vsyncpa [#allocation3], 1 }

</bundles_post_ra>
